<compile_context>
chip_gen: v6e
topology: v6e:2x2x1
jax: 0.10.0
libtpu: 0.0.40
codegen_flags: <defaults>
</compile_context>

<pallas_src>
import functools

import jax
import jax.numpy as jnp
from jax.experimental import pallas as pl
from jax.experimental.pallas import tpu as pltpu


def _int_pow(x, p):
    """x**p via repeated multiplies for integer p >= 1 (exact, VPU-only)."""
    if isinstance(p, int) and p >= 1:
        result = None
        base = x
        e = p
        while e > 0:
            if e & 1:
                result = base if result is None else result * base
            e >>= 1
            if e:
                base = base * base
        return result
    return x ** p  # non-integer / non-positive p: general pow (matches torch .pow)


def _lane_collapse(x):
    """(R, m*128) -> (R, 128) by summing 128-lane column groups.

    Only 128-aligned lane slices (vreg-column selection, no data movement)
    plus VALU adds, so no XLU cross-lane reduce enters the loop-carried
    accumulation chain.  Log-depth -> tiny trace even for very wide tiles.
    """
    m = x.shape[1] // 128
    extra = None
    while m > 1:
        if m % 2:
            tail = x[:, (m - 1) * 128:]
            extra = tail if extra is None else extra + tail
            m -= 1
            x = x[:, : m * 128]
        half = m // 2
        x = x[:, : half * 128] + x[:, half * 128:]
        m = half
    if extra is not None:
        x = x + extra
    return x


def _dice_partial_kernel(pred_ref, targ_ref, num_ref, den_ref, *,
                         p, d_valid, d_tile):
    """Accumulate lane-wise partial sums of pred*targ and pred^p + targ^p.

    The (n_tile, 128) f32 outputs ARE the accumulators: their index_map
    ignores the reduction axis k, so they stay VMEM-resident across all D
    tiles of one N block (no scratch, no finalize copy).
    """
    k = pl.program_id(1)

    @pl.when(k == 0)
    def _init():
        num_ref[...] = jnp.zeros_like(num_ref)
        den_ref[...] = jnp.zeros_like(den_ref)

    pr = pred_ref[...]
    tg = targ_ref[...]
    # 16-bit float inputs: keep pointwise math in the native dtype (bf16 VALU
    # on v6e/v7x, 2x elements per vreg), accumulate in f32.  Otherwise f32.
    native16 = (pred_ref.dtype == targ_ref.dtype
                and jnp.issubdtype(pred_ref.dtype, jnp.floating)
                and jnp.dtype(pred_ref.dtype).itemsize == 2)
    if not native16:
        pr = pr.astype(jnp.float32)
        tg = tg.astype(jnp.float32)

    num_term = (pr * tg).astype(jnp.float32)
    den_term = (_int_pow(pr, p) + _int_pow(tg, p)).astype(jnp.float32)

    def _accumulate(nt, dt):
        num_ref[...] += _lane_collapse(nt)
        den_ref[...] += _lane_collapse(dt)

    if d_valid % d_tile != 0:
        # Ragged feature dim: only the LAST D tile overhangs the logical end,
        # so only that tile pays for the iota/compare/select.  Masking happens
        # AFTER the pointwise math (a select), so OOB-tail garbage/NaN cannot
        # propagate into the accumulators.
        is_last = k == pl.num_programs(1) - 1

        @pl.when(is_last)
        def _masked():
            lane = jax.lax.broadcasted_iota(jnp.int32, num_term.shape, 1)
            in_bounds = (k * d_tile + lane) < d_valid
            _accumulate(jnp.where(in_bounds, num_term, 0.0),
                        jnp.where(in_bounds, den_term, 0.0))

        @pl.when(jnp.logical_not(is_last))
        def _unmasked():
            _accumulate(num_term, den_term)
    else:
        _accumulate(num_term, den_term)


def binary_dice_loss(predict, target, smooth=1.0, p=2, reduction="mean",
                     d_tile=None, n_tile=None, vmem_limit_bytes=None,
                     target_block_bytes=4 * 1024 * 1024,
                     pipeline_budget_bytes=20 * 1024 * 1024):
    assert predict.shape[0] == target.shape[0], (
        "predict & target batch size don't match")
    n = predict.shape[0]
    pred2 = predict.reshape(n, -1)
    targ2 = target.reshape(n, -1)
    d = pred2.shape[1]

    # Normalize float-integer p (e.g. 2.0) so it takes the exact
    # repeated-multiply path instead of EUP pow.
    if isinstance(p, float) and float(p).is_integer():
        p = int(p)

    itemsize = max(jnp.dtype(pred2.dtype).itemsize, jnp.dtype(targ2.dtype).itemsize)
    sublane = {4: 8, 2: 16, 1: 32}.get(itemsize, 8)

    # Small batches leave most sublanes of every vreg empty: fold the row-major
    # feature dim into extra sublane rows ([N, D] -> [N*f, D/f], pure reshape);
    # the f partials per original row combine in the epilogue.  Prefer a fold
    # that also yields >= 2 N blocks (v7x megacore) while keeping >= 128 lanes.
    fold = 1
    if n < sublane and d % sublane == 0:
        fold = sublane
        if (n * fold < 2 * sublane and d % (2 * sublane) == 0
                and d // (2 * sublane) >= 128):
            fold = 2 * sublane
    n_packed = n * fold
    d_packed = d // fold
    if fold != 1:
        pred2 = pred2.reshape(n_packed, d_packed)
        targ2 = targ2.reshape(n_packed, d_packed)

    # ---- tile selection --------------------------------------------------
    d_cap = ((d_packed + 127) // 128) * 128

    def footprint(nt, dt):
        # 2 inputs x 2 pipeline buffers + 2 lane-dense f32 outputs x 2 buffers.
        return 2 * 2 * nt * dt * itemsize + 2 * 2 * nt * 128 * 4

    # Prefer full-D blocks (contiguous HBM stream, k extent 1); shrink the N
    # tile to fit the pipeline budget.  Only truly huge D falls back to
    # D tiling at ~target_block_bytes per input block.
    auto_n, auto_d = n_packed, d_cap
    while auto_n > sublane and footprint(auto_n, auto_d) > pipeline_budget_bytes:
        auto_n = max(sublane, ((auto_n // 2) // sublane) * sublane)
    if footprint(auto_n, auto_d) > pipeline_budget_bytes:
        auto_n = min(n_packed, 256)
        if auto_n < n_packed:
            auto_n = max(sublane, (auto_n // sublane) * sublane)
        auto_d = target_block_bytes // max(1, auto_n * itemsize)
        auto_d = max(128, (min(auto_d, d_cap) // 128) * 128)
        # TODO(synk): for tiny-N / huge-D shapes the grid here is (1, K); split
        # the D reduction across a leading parallel axis so both v7x
        # TensorCores get work.
    elif auto_n >= n_packed and n_packed >= 2 * sublane:
        # Full-N fits one block: split it so the "parallel" N axis has >= 2
        # blocks -> shardable across both v7x TensorCores (no-op on v5e/v6e).
        auto_n = max(sublane,
                     ((pl.cdiv(n_packed, 2) + sublane - 1) // sublane) * sublane)

    if n_tile is None:
        n_tile = auto_n
    if d_tile is None:
        d_tile = auto_d
    n_tile = min(int(n_tile), n_packed)
    if n_tile < n_packed:
        n_tile = max(sublane, (n_tile // sublane) * sublane)
    d_tile = max(128, (min(int(d_tile), d_cap) // 128) * 128)

    grid = (pl.cdiv(n_packed, n_tile), pl.cdiv(d_packed, d_tile))

    # Raise the scoped-VMEM limit only when the chosen tiles need it; cap it
    # so a config that fit v6e's 128 MiB VMEM cannot blow past v7x's 64 MiB.
    est_vmem = footprint(n_tile, d_tile)
    if vmem_limit_bytes is None and est_vmem > 10 * 1024 * 1024:
        vmem_limit_bytes = min(int(est_vmem * 1.5) + (4 << 20), 48 << 20)
    cp_kwargs = dict(dimension_semantics=("parallel", "arbitrary"))
    if vmem_limit_bytes is not None:
        cp_kwargs["vmem_limit_bytes"] = int(vmem_limit_bytes)

    kernel = functools.partial(_dice_partial_kernel, p=p,
                               d_valid=d_packed, d_tile=d_tile)

    # NOTE: when n_packed % n_tile != 0 the last N block overhangs; its rows
    # only feed output rows past n_packed, which Pallas clips on writeback and
    # the epilogue never reads (row-independent accumulation).
    num_part, den_part = pl.pallas_call(
        kernel,
        out_shape=(jax.ShapeDtypeStruct((n_packed, 128), jnp.float32),
                   jax.ShapeDtypeStruct((n_packed, 128), jnp.float32)),
        grid_spec=pltpu.PrefetchScalarGridSpec(
            num_scalar_prefetch=0,
            grid=grid,
            in_specs=[
                pl.BlockSpec((n_tile, d_tile), lambda i, k: (i, k)),
                pl.BlockSpec((n_tile, d_tile), lambda i, k: (i, k)),
            ],
            out_specs=[
                pl.BlockSpec((n_tile, 128), lambda i, k: (i, 0)),
                pl.BlockSpec((n_tile, 128), lambda i, k: (i, 0)),
            ],
        ),
        compiler_params=pltpu.CompilerParams(**cp_kwargs),
    )(pred2, targ2)

    # Tiny epilogue in plain JAX: cross-lane + fold reduction, smooth, loss,
    # and the batch reduction.  (n*fold, 128) row-major == (n, fold*128).
    num = num_part.reshape(n, fold * 128).sum(axis=1) + smooth
    den = den_part.reshape(n, fold * 128).sum(axis=1) + smooth
    loss = 1.0 - num / den

    if reduction == "mean":
        return jnp.mean(loss)
    elif reduction == "sum":
        return jnp.sum(loss)
    elif reduction == "none":
        return loss
    else:
        raise Exception("Unexpected reduction {}".format(reduction))


def _reference(predict, target, smooth=1.0, p=2, reduction="mean"):
    n = predict.shape[0]
    pr = predict.reshape(n, -1).astype(jnp.float32)
    tg = target.reshape(n, -1).astype(jnp.float32)
    num = jnp.sum(pr * tg, axis=1) + smooth
    den = jnp.sum(pr ** p + tg ** p, axis=1) + smooth
    loss = 1.0 - num / den
    if reduction == "mean":
        return jnp.mean(loss)
    elif reduction == "sum":
        return jnp.sum(loss)
    return loss


if __name__ == "__main__":
    key = jax.random.PRNGKey(0)
    k1, k2, k3, k4 = jax.random.split(key, 4)

    # Primary check: [N, C, H, W] binary-segmentation style input.
    N, C, H, W = 2, 4, 16, 16
    predict = jax.nn.sigmoid(jax.random.normal(k1, (N, C, H, W), jnp.float32))
    target = (jax.random.uniform(k2, (N, C, H, W)) > 0.5).astype(jnp.float32)

    out = binary_dice_loss(predict, target, smooth=1.0, p=2, reduction="mean")
    out = jax.block_until_ready(out)
    ref = _reference(predict, target, smooth=1.0, p=2, reduction="mean")
    assert jnp.allclose(out, ref, atol=1e-5, rtol=1e-5), (out, ref)

    # 'none' reduction path.
    out_n = jax.block_until_ready(
        binary_dice_loss(predict, target, reduction="none"))
    ref_n = _reference(predict, target, reduction="none")
    assert jnp.allclose(out_n, ref_n, atol=1e-5, rtol=1e-5), (out_n, ref_n)

    # Ragged feature dim (D=315, not a multiple of 128) -> exercises the
    # last-tile masking path (no wrapper-side padding anywhere).
    pr2 = jax.nn.sigmoid(jax.random.normal(k3, (3, 5, 7, 9), jnp.float32))
    tg2 = (jax.random.uniform(k4, (3, 5, 7, 9)) > 0.5).astype(jnp.float32)
    out2 = jax.block_until_ready(
        binary_dice_loss(pr2, tg2, smooth=1.0, p=2, reduction="sum"))
    ref2 = _reference(pr2, tg2, smooth=1.0, p=2, reduction="sum")
    assert jnp.allclose(out2, ref2, atol=1e-5, rtol=1e-5), (out2, ref2)

    # bf16 inputs -> exercises native 16-bit VALU math + f32 accumulation
    # (small precision delta vs f32 reference is expected and documented).
    pr3 = predict.astype(jnp.bfloat16)
    tg3 = target.astype(jnp.bfloat16)
    out3 = jax.block_until_ready(
        binary_dice_loss(pr3, tg3, smooth=1.0, p=2, reduction="mean"))
    ref3 = _reference(pr3, tg3, smooth=1.0, p=2, reduction="mean")
    assert jnp.allclose(out3, ref3, atol=1e-2, rtol=1e-2), (out3, ref3)

    print("KERNEL_OK")
</pallas_src>

<mosaic_0001>
module attributes {stable_mosaic.version = 11 : i64} {
  func.func @_dice_partial_kernel(%arg0: i32, %arg1: i32, %arg2: memref<8x128xf32, #tpu.memory_space<vmem>>, %arg3: memref<8x128xf32, #tpu.memory_space<vmem>>, %arg4: memref<8x128xf32, #tpu.memory_space<vmem>>, %arg5: memref<8x128xf32, #tpu.memory_space<vmem>>) attributes {dimension_semantics = [#tpu.dimension_semantics<parallel>, #tpu.dimension_semantics<arbitrary>], iteration_bounds = array<i64: 2, 1>, scalar_prefetch = 0 : i64, scratch_operands = 0 : i64, tpu.core_type = #tpu.core_type<tc>, window_params = [{transform_indices = @transform_0, window_bounds = array<i64: 8, 128>}, {transform_indices = @transform_1, window_bounds = array<i64: 8, 128>}, {transform_indices = @transform_2, window_bounds = array<i64: 8, 128>}, {transform_indices = @transform_3, window_bounds = array<i64: 8, 128>}]} {
    %c0_i32 = arith.constant 0 : i32
    %0 = arith.cmpi eq, %arg1, %c0_i32 : i32
    %1 = arith.extui %0 : i1 to i32
    %c0_i32_0 = arith.constant 0 : i32
    %2 = arith.cmpi ne, %1, %c0_i32_0 : i32
    scf.if %2 {
      %cst = arith.constant 0.000000e+00 : f32
      %15 = vector.broadcast %cst : f32 to vector<8x128xf32>
      %c0_12 = arith.constant 0 : index
      %c0_13 = arith.constant 0 : index
      %16 = vector.load %arg4[%c0_12, %c0_13] : memref<8x128xf32, #tpu.memory_space<vmem>>, vector<8x128xf32>
      tpu.vector_store %arg4[%c0_12, %c0_13], %15 {strides = array<i32>} : memref<8x128xf32, #tpu.memory_space<vmem>>, vector<8x128xf32>,
      %cst_14 = arith.constant 0.000000e+00 : f32
      %17 = vector.broadcast %cst_14 : f32 to vector<8x128xf32>
      %c0_15 = arith.constant 0 : index
      %c0_16 = arith.constant 0 : index
      %18 = vector.load %arg5[%c0_15, %c0_16] : memref<8x128xf32, #tpu.memory_space<vmem>>, vector<8x128xf32>
      tpu.vector_store %arg5[%c0_15, %c0_16], %17 {strides = array<i32>} : memref<8x128xf32, #tpu.memory_space<vmem>>, vector<8x128xf32>,
    } else {
    }
    %c0 = arith.constant 0 : index
    %c0_1 = arith.constant 0 : index
    %3 = vector.load %arg2[%c0, %c0_1] : memref<8x128xf32, #tpu.memory_space<vmem>>, vector<8x128xf32>
    %c0_2 = arith.constant 0 : index
    %c0_3 = arith.constant 0 : index
    %4 = vector.load %arg3[%c0_2, %c0_3] : memref<8x128xf32, #tpu.memory_space<vmem>>, vector<8x128xf32>
    %5 = arith.mulf %3, %4 : vector<8x128xf32>
    %6 = arith.mulf %3, %3 : vector<8x128xf32>
    %7 = arith.mulf %4, %4 : vector<8x128xf32>
    %8 = arith.addf %6, %7 : vector<8x128xf32>
    %c0_4 = arith.constant 0 : index
    %c0_5 = arith.constant 0 : index
    %9 = vector.load %arg4[%c0_4, %c0_5] : memref<8x128xf32, #tpu.memory_space<vmem>>, vector<8x128xf32>
    %10 = arith.addf %9, %5 : vector<8x128xf32>
    %c0_6 = arith.constant 0 : index
    %c0_7 = arith.constant 0 : index
    %11 = vector.load %arg4[%c0_6, %c0_7] : memref<8x128xf32, #tpu.memory_space<vmem>>, vector<8x128xf32>
    tpu.vector_store %arg4[%c0_6, %c0_7], %10 {strides = array<i32>} : memref<8x128xf32, #tpu.memory_space<vmem>>, vector<8x128xf32>,
    %c0_8 = arith.constant 0 : index
    %c0_9 = arith.constant 0 : index
    %12 = vector.load %arg5[%c0_8, %c0_9] : memref<8x128xf32, #tpu.memory_space<vmem>>, vector<8x128xf32>
    %13 = arith.addf %12, %8 : vector<8x128xf32>
    %c0_10 = arith.constant 0 : index
    %c0_11 = arith.constant 0 : index
    %14 = vector.load %arg5[%c0_10, %c0_11] : memref<8x128xf32, #tpu.memory_space<vmem>>, vector<8x128xf32>
    tpu.vector_store %arg5[%c0_10, %c0_11], %13 {strides = array<i32>} : memref<8x128xf32, #tpu.memory_space<vmem>>, vector<8x128xf32>,
    return
  }
  func.func @transform_0(%arg0: i32, %arg1: i32) -> (i32, i32) {
    %c0_i32 = arith.constant 0 : i32
    return %arg0, %arg1 : i32, i32
  }
  func.func @transform_1(%arg0: i32, %arg1: i32) -> (i32, i32) {
    %c0_i32 = arith.constant 0 : i32
    return %arg0, %arg1 : i32, i32
  }
  func.func @transform_2(%arg0: i32, %arg1: i32) -> (i32, i32) {
    %c0_i32 = arith.constant 0 : i32
    %c0_i32_0 = arith.constant 0 : i32
    return %arg0, %c0_i32 : i32, i32
  }
  func.func @transform_3(%arg0: i32, %arg1: i32) -> (i32, i32) {
    %c0_i32 = arith.constant 0 : i32
    %c0_i32_0 = arith.constant 0 : i32
    return %arg0, %c0_i32 : i32, i32
  }
}

</mosaic_0001>

<bundles_post_ra>
// kernel: tpu_custom_call.1
= control target key start
LH: loop header
LB: loop body
LE: loop exit
PB: predicated region body
PF: predicated region fallthrough
CT: control target
= control target key end

     0   :  { %9 = vsyncpa [#allocation3], 0  ;;  %s936_s0 = inlined_call_operand.hbm [shape: f32[16,128], index: 0, kind: input, shape index: {}]   ;;  %s937_s1 = inlined_call_operand.hbm [shape: f32[16,128], index: 1, kind: input, shape index: {}]   ;;  %s938_s2 = inlined_call_operand.hbm [shape: f32[16,128], index: 2, kind: output, shape index: {0}]   ;;  %s939_s3 = inlined_call_operand.hbm [shape: f32[16,128], index: 3, kind: output, shape index: {1}]  }
   0x1   :  { %11 = vsyncpa [#allocation3 + $0x1], 0 }
   0x2   :  { %12 = vsyncpa [#allocation6], 0 }
   0x3   :  { %14 = vsyncpa [#allocation6 + $0x1], 0 }
   0x4   :  { %15 = vsyncpa [#allocation4], 0 }
   0x5   :  { %17 = vsyncpa [#allocation4 + $0x1], 0 }
   0x6   :  { %18 = vsyncpa [#allocation9], 0 }
   0x7   :  { %20 = vsyncpa [#allocation9 + $0x1], 0  ;;  %s725_s12 = smov 0   ;;  %s727_s13 = smov 0  }
   0x8   :  { %s729_s14 = smov 0   ;;  %s731_s15 = smov 0  }
   0x9   :  { %s733_s16 = smov 0   ;;  %s735_s17 = smov 0  }
   0xa LB: > { %s437_s18 = sadd.s32 4294967295, %s699_s17   ;;  %s438_s19 = sadd.s32 4294967294, %s699_s17   ;;  %s699_s17 = sphi %s735_s17, %s26_s17   ;;  %s695_s16 = sphi %s733_s16, %s951_s16   ;;  %s691_s15 = sphi %s731_s15, %s950_s15   ;;  %s687_s14 = sphi %s729_s14, %s949_s14   ;;  %s683_s13 = sphi %s727_s13, %s948_s13   ;;  %s679_s12 = sphi %s725_s12, %s947_s12  }
   0xb   : > { %s38_s20 = sadd.s32 1, %s695_s16  ;;  %s47_s21 = sadd.s32 1, %s687_s14 }
   0xc   : > { %p40_p0 = scmp.ge.s32.totalorder %s38_s20, 2  ;;  %p54_p1 = scmp.ne.s32.totalorder %s687_s14, %s683_s13 }
   0xd   : > { %p55_p2 = scmp.eq.s32.totalorder %s699_s17, 0  ;;  %p60_p3 = scmp.ne.s32.totalorder %s683_s13, %s679_s12 }
   0xe   : > { %s953_s20 = smov (%p40_p0, %s38_s20), 0  ;;  %p61_p5 = scmp.eq.s32.totalorder %s437_s18, 0 }
   0xf   : > { %p766_p4 = por %p55_p2, %p54_p1  ;;  %s42_s23 = ssub.s32 %s695_s16, %s953_s20 }
  0x10   : > { %p112_p6 = scmp.eq.s32.totalorder %s437_s18, 1  ;;  %p45_p7 = scmp.eq.s32.totalorder %s42_s23, 0 }
  0x11   : > { %p772_p8 = por %p61_p5, %p60_p3  ;;  %p118_p10 = scmp.eq.s32.totalorder %s438_s19, 1 }
  0x12   : > { %p776_p9 = por %p112_p6, %p54_p1  ;;  %p478_p13 = scmp.lt.s32.totalorder %s699_s17, 2 }
  0x13   : > { %s781_s26 = scalar_select %p45_p7, %s687_s14, %s47_s21  }
  0x14   : > { %p783_p11 = por %p118_p10, %p60_p3  ;;  %s790_s28 = sand.u32 1, %s687_s14  }
  0x15   : > { %s441_s29 = sshll.u32 %s790_s28, 3  ;;  %s442_s30 = sshll.u32 %s695_s16, 7 }
  0x16   : > { %s174_s6 = scalar_lea.hbm %s936_s0, %s442_s30  ;;  %s168_s7 = scalar_lea.vmem [#allocation2], %s441_s29 }
  0x17   : > { %s176_s8 = sshll.u32 %s168_s7, 4  ;;  %p799_p0 = pnand %p478_p13, %p766_p4  ;;  %s177_s8 = int_to_ptr.vmem [resolvable:$true] %s176_s8 }
  0x18   : > { %p445_p1 = scmp.ge.s32.totalorder %s699_s17, 1  ;;  %p200_p2 = scmp.lt.s32.totalorder %s699_s17, 3 }
  0x19   : > { %s165_s10 = scalar_lea.sflag [#allocation3], %s790_s28  ;;  %p531_p3 = pneg %p799_p0 }
  0x1a   : > { %s542_s11 = scalar_lea.vmem %s177_s8, 128  ;;  %s701_s18 = smov [#allocation2]  }
  0x1b   : > { %p543_p5 = scmp.ne.s32.totalorder %s177_s8, %s542_s11  ;;  %s547_s19 = sshll.u32 %s701_s18, 4  ;;  %s548_s19 = int_to_ptr.vmem [resolvable:$false] %s547_s19 }
  0x1c   : > { %s549_s21 = scalar_lea.vmem %s548_s19, 256  ;;  %p550_p4 = scmp.lt.s32.totalorder %s177_s8, %s548_s19 }
  0x1d   : > { %p545_p6 = pnand %p543_p5, %p531_p3  ;;  %p551_p10 = scmp.lt.s32.totalorder %s549_s21, %s542_s11 }
  0x1f   : > { %p546_p7 = pneg %p545_p6  ;;  %p552_p13 = por %p551_p10, %p550_p4 }
  0x21   : > { %p553_p12 = pnand %p552_p13, %p546_p7 }
  0x23   : > { %556 = shalt.err (!%p553_p12)
}
  0x24   : > { %467 = dma.hbm_to_vmem [thread:$0]  (!%p799_p0), %s174_s6, 128, %s177_s8, %s165_s10  }
  0x25   : > { %p817_p5 = pnand %p445_p1, %p200_p2  ;;  %s193_s5 = scalar_lea.hbm %s937_s1, %s442_s30 }
  0x26   : > { %s187_s7 = scalar_lea.vmem [#allocation5], %s441_s29  ;;  %s184_s18 = scalar_lea.sflag [#allocation6], %s790_s28 }
  0x27   : > { %s195_s11 = sshll.u32 %s187_s7, 4  ;;  %s702_s6 = smov [#allocation5]   ;;  %s196_s11 = int_to_ptr.vmem [resolvable:$true] %s195_s11 }
  0x28   : > { %s570_s19 = scalar_lea.vmem %s196_s11, 128  ;;  %s575_s8 = sshll.u32 %s702_s6, 4  ;;  %s576_s8 = int_to_ptr.vmem [resolvable:$false] %s575_s8 }
  0x29   : > { %p571_p12 = scmp.ne.s32.totalorder %s196_s11, %s570_s19  ;;  %s577_s10 = scalar_lea.vmem %s576_s8, 256 }
  0x2a   : > { %p578_p1 = scmp.lt.s32.totalorder %s196_s11, %s576_s8  ;;  %p579_p2 = scmp.lt.s32.totalorder %s577_s10, %s570_s19 }
  0x2b   : > { %p573_p6 = pnand %p571_p12, %p531_p3 }
  0x2c   : > { %p580_p4 = por %p579_p2, %p578_p1 }
  0x2d   : > { %p574_p7 = pneg %p573_p6 }
  0x2f   : > { %p581_p10 = pnand %p580_p4, %p574_p7 }
  0x31   : > { %584 = shalt.err (!%p581_p10)
}
  0x32   : > { %470 = dma.hbm_to_vmem [thread:$0]  (!%p799_p0), %s193_s5, 128, %s196_s11, %s184_s18  }
  0x33   : > { %204 = sbr.rel (%p817_p5) target bundleno = 106 (0x6a), region = 28  ;;  %s833_s28 = sand.u32 (!%p817_p5), 1, %s683_s13  }
  0x34   : > { %s836_s29 = sshll.u32 (!%p817_p5), %s833_s28, 3  ;;  %s207_s30 = scalar_lea.sflag (!%p817_p5), [#allocation3], %s833_s28 }
  0x35   : > { %s210_s21 = scalar_lea.vmem (!%p817_p5), [#allocation2], %s836_s29 }
  0x38   : > { %662 = dma.done.wait (%p772_p8), %s207_s30, 128  }
  0x39   : > { %664 = vsyncadd (%p772_p8), %s207_s30, 4294967168  ;;  %s216_s9 = scalar_lea.sflag [#allocation6], %s833_s28  ;;  %s219_s22 = scalar_lea.vmem [#allocation5], %s836_s29 }
  0x3a   : > { %666 = dma.done.wait (%p772_p8), %s216_s9, 128  }
  0x3b   : > { %668 = vsyncadd (%p772_p8), %s216_s9, 4294967168  ;;  %v258_v0 = vld [vmem:[%s210_s21] sm:$0xff]  ;;  %v259_v1 = vld [vmem:[%s219_s22] sm:$0xff]  ;;  %s452_s23 = sshll.u32 %s691_s15, 7  ;;  %s244_s4 = scalar_lea.vmem [#allocation7], %s836_s29 }
  0x3c   : > { %s289_s5 = sshll.u32 %s244_s4, 4  ;;  %v260_v2 = vmul.f32 %v259_v1, %v258_v0  ;;  %v261_v3 = vmul.f32 %v258_v0, %v258_v0  ;;  %v262_v4 = vmul.f32 %v259_v1, %v259_v1  ;;  %s251_s7 = scalar_lea.vmem [#allocation8], %s836_s29  ;;  %s860_s5 = int_to_ptr.vmem [resolvable:$true] %s289_s5 }
  0x3d   : > { %s302_s11 = sshll.u32 %s251_s7, 4  ;;  %s858_s19 = scalar_lea.hbm %s938_s2, %s452_s23  ;;  %s867_s11 = int_to_ptr.vmem [resolvable:$true] %s302_s11 }
  0x3e   : > { %v263_v5 = vadd.f32 %v262_v4, %v261_v3  ;;  %266 = vst [vmem:[%s244_s4] sm:$0xff] %v260_v2  ;;  %s865_s8 = scalar_lea.hbm %s939_s3, %s452_s23  ;;  %s271_s10 = scalar_lea.sflag [#allocation4], %s833_s28 }
  0x3f   : > { %s585_s30 = scalar_lea.vmem %s860_s5, 128  ;;  %s703_s21 = smov [#allocation7]  }
  0x40   : > { %p586_p8 = scmp.ne.s32.totalorder %s860_s5, %s585_s30  ;;  %s589_s9 = sshll.u32 %s703_s21, 4  ;;  %s590_s9 = int_to_ptr.vmem [resolvable:$false] %s589_s9 }
  0x41   : > { %s591_s22 = scalar_lea.vmem %s590_s9, 256  ;;  %p592_p13 = scmp.lt.s32.totalorder %s860_s5, %s590_s9 }
  0x42   : > { %p587_p0 = pnand %p586_p8, %p776_p9  ;;  %p593_p5 = scmp.lt.s32.totalorder %s591_s22, %s585_s30 }
  0x44   : > { %p588_p3 = pneg %p587_p0  ;;  %p594_p12 = por %p593_p5, %p592_p13 }
  0x46   : > { %p595_p6 = pnand %p594_p12, %p588_p3 }
  0x48   : > { %598 = shalt.err (!%p595_p6)
}
  0x49   : > { %s599_s23 = scalar_lea.hbm %s858_s19, 128  ;;  %s603_s18 = scalar_lea.hbm %s938_s2, 256 }
  0x4a   : > { %p600_p7 = scmp.ne.s32.totalorder %s858_s19, %s599_s23  ;;  %p604_p4 = scmp.lt.s32.totalorder %s858_s19, %s938_s2 }
  0x4b   : > { %p605_p10 = scmp.lt.s32.totalorder %s603_s18, %s599_s23 }
  0x4c   : > { %p601_p1 = pnand %p600_p7, %p776_p9 }
  0x4d   : > { %p606_p8 = por %p605_p10, %p604_p4 }
  0x4e   : > { %p602_p2 = pneg %p601_p1 }
  0x50   : > { %p607_p0 = pnand %p606_p8, %p602_p2 }
  0x52   : > { %610 = shalt.err (!%p607_p0)
}
  0x53   : > { %460 = dma.vmem_to_hbm [thread:$0]  (%p776_p9), %s860_s5, 128, %s858_s19, %s271_s10   ;;  %269 = vst [vmem:[%s251_s7] sm:$0xff] %v263_v5 }
  0x54   : > { %s276_s30 = scalar_lea.sflag [#allocation9], %s833_s28  ;;  %s611_s21 = scalar_lea.vmem %s867_s11, 128 }
  0x55   : > { %p612_p3 = scmp.ne.s32.totalorder %s867_s11, %s611_s21  ;;  %s704_s9 = smov [#allocation8]  }
  0x56   : > { %s615_s22 = sshll.u32 %s704_s9, 4  ;;  %s616_s22 = int_to_ptr.vmem [resolvable:$false] %s615_s22 }
  0x57   : > { %p613_p13 = pnand %p612_p3, %p776_p9  ;;  %s617_s23 = scalar_lea.vmem %s616_s22, 256 }
  0x58   : > { %p618_p12 = scmp.lt.s32.totalorder %s867_s11, %s616_s22  ;;  %p619_p6 = scmp.lt.s32.totalorder %s617_s23, %s611_s21 }
  0x59   : > { %p614_p5 = pneg %p613_p13 }
  0x5a   : > { %p620_p7 = por %p619_p6, %p618_p12 }
  0x5c   : > { %p621_p1 = pnand %p620_p7, %p614_p5 }
  0x5e   : > { %624 = shalt.err (!%p621_p1)
}
  0x5f   : > { %s625_s29 = scalar_lea.hbm %s865_s8, 128  ;;  %s629_s7 = scalar_lea.hbm %s939_s3, 256 }
  0x60   : > { %p626_p2 = scmp.ne.s32.totalorder %s865_s8, %s625_s29  ;;  %p630_p8 = scmp.lt.s32.totalorder %s865_s8, %s939_s3 }
  0x61   : > { %p631_p0 = scmp.lt.s32.totalorder %s629_s7, %s625_s29 }
  0x62   : > { %p627_p4 = pnand %p626_p2, %p776_p9 }
  0x63   : > { %p632_p3 = por %p631_p0, %p630_p8 }
  0x64   : > { %p628_p10 = pneg %p627_p4 }
  0x66   : > { %p633_p13 = pnand %p632_p3, %p628_p10 }
  0x68   : > { %636 = shalt.err (!%p633_p13)
}
  0x69   : > { %461 = dma.vmem_to_hbm [thread:$0]  (%p776_p9), %s867_s11, 128, %s865_s8, %s276_s30  }
  0x6a PF: > { %s314_s4 = sand.u32 1, %s679_s12   ;;  %p946_p5 = scmp.ge.s32.totalorder %s699_s17, 2 }
  0x6b   : > { %s315_s24 = scalar_lea.sflag [#allocation4], %s314_s4 }
  0x6c   : > { %p472_p12 = pnand %p946_p5, %p783_p11 }
  0x6e   : > { %p473_p6 = pneg %p472_p12 }
  0x70   : > { %670 = dma.done.wait (%p473_p6), %s315_s24, 128  }
  0x71   : > { %672 = vsyncadd (%p473_p6), %s315_s24, 4294967168  ;;  %s324_s18 = scalar_lea.sflag [#allocation9], %s314_s4 }
  0x72   : > { %674 = dma.done.wait (%p473_p6), %s324_s18, 128  }
  0x73   : > { %676 = vsyncadd (%p473_p6), %s324_s18, 4294967168  ;;  %s26_s17 = sadd.s32 1, %s699_s17   ;;  %s947_s12 = smov %s683_s13 }
  0x74   : > { %p23_p7 = scmp.ge.s32.totalorder %s26_s17, 4   ;;  %s948_s13 = smov %s687_s14 }
  0x75   : > { %s949_s14 = smov %s781_s26  ;;  %s950_s15 = smov %s695_s16 }
  0x76   : > { %s951_s16 = smov %s953_s20  ;;  %25 = sbr.rel (!%p23_p7) target bundleno = 10 (0xa), region = 107 }
  0x7b   :  { %329 = vsyncpa [#allocation3], 1 }
  0x7c   :  { %331 = vsyncpa [#allocation3 + $0x1], 1 }
  0x7d   :  { %332 = vsyncpa [#allocation6], 1 }
  0x7e   :  { %334 = vsyncpa [#allocation6 + $0x1], 1 }
  0x7f   :  { %335 = vsyncpa [#allocation4], 1 }
  0x80   :  { %337 = vsyncpa [#allocation4 + $0x1], 1 }
  0x81   :  { %338 = vsyncpa [#allocation9], 1 }
  0x82   :  { %340 = vsyncpa [#allocation9 + $0x1], 1 }

</bundles_post_ra>
